<compile_context>
chip_gen: v7x
topology: tpu7x:2x2x1
jax: 0.10.0
libtpu: 0.0.40
codegen_flags: <defaults>
</compile_context>

<pallas_src>
import functools

import jax
import jax.numpy as jnp
from jax.experimental import pallas as pl
from jax.experimental.pallas import tpu as pltpu


def _round_up(n, m):
    return ((n + m - 1) // m) * m


def _fcnn_kernel_split(x_ref, a_ref, w1x_ref, w1a_ref, b1_ref,
                       w2_ref, b2_ref, w3_ref, b3_ref, o_ref):
    """Fused concat variant: input arrives as two blocks, W1 is pre-split."""
    h1 = jnp.dot(x_ref[...], w1x_ref[...], preferred_element_type=jnp.float32)
    h1 = h1 + jnp.dot(a_ref[...], w1a_ref[...], preferred_element_type=jnp.float32)
    h1 = jnp.tanh(h1 + b1_ref[...])
    h2 = jnp.tanh(
        jnp.dot(h1, w2_ref[...], preferred_element_type=jnp.float32) + b2_ref[...]
    )
    out = jnp.dot(h2, w3_ref[...], preferred_element_type=jnp.float32) + b3_ref[...]
    o_ref[...] = out.astype(o_ref.dtype)


def _fcnn_kernel_plain(x_ref, w1_ref, b1_ref, w2_ref, b2_ref, w3_ref, b3_ref, o_ref):
    """No additional_inputs: single input stream."""
    h1 = jnp.tanh(
        jnp.dot(x_ref[...], w1_ref[...], preferred_element_type=jnp.float32) + b1_ref[...]
    )
    h2 = jnp.tanh(
        jnp.dot(h1, w2_ref[...], preferred_element_type=jnp.float32) + b2_ref[...]
    )
    out = jnp.dot(h2, w3_ref[...], preferred_element_type=jnp.float32) + b3_ref[...]
    o_ref[...] = out.astype(o_ref.dtype)


@functools.partial(jax.jit, static_argnames=("tb",))
def fcnn_forward(x, additional_inputs, params, *, tb=512):
    """FCNN forward.

    x: (B, x_dim) f32
    additional_inputs: (B, add_dim) f32 or None
    params: (w1, b1, w2, b2, w3, b3) with w1: (x_dim + add_dim, H), biases (1, ...)
    tb: batch tile (sweep 256..1024 on real workloads; keep B/tb >= ~8 on v7x
        so both TensorCores get work).
    """
    w1, b1, w2, b2, w3, b3 = params
    hidden_dim = w1.shape[1]
    out_dim = w3.shape[1]

    B = x.shape[0]
    x_dim = x.shape[1]

    # Clamp the batch tile for small batches and pad B to a multiple of it.
    # (Block second-to-last dim must be a multiple of 8 unless it equals the
    #  full array dim; padding to a multiple of 8 keeps both cases legal.)
    tb_eff = min(tb, _round_up(B, 8))
    tb_eff = _round_up(tb_eff, 8)
    B_pad = _round_up(B, tb_eff)
    pad = B_pad - B
    if pad:
        x = jnp.pad(x, ((0, pad), (0, 0)))
        if additional_inputs is not None:
            additional_inputs = jnp.pad(additional_inputs, ((0, pad), (0, 0)))

    grid = (B_pad // tb_eff,)

    # Weights / biases are tiny: constant index_map keeps them VMEM-resident.
    full = lambda shape: pl.BlockSpec(shape, lambda i: (0, 0))
    row_tile = lambda d: pl.BlockSpec((tb_eff, d), lambda i: (i, 0))

    out_shape = jax.ShapeDtypeStruct((B_pad, out_dim), x.dtype)
    compiler_params = pltpu.CompilerParams(dimension_semantics=("parallel",))

    if additional_inputs is not None:
        add_dim = additional_inputs.shape[1]
        # Split W1 so the concat never round-trips through HBM.
        w1x = w1[:x_dim, :]
        w1a = w1[x_dim:, :]
        out = pl.pallas_call(
            _fcnn_kernel_split,
            out_shape=out_shape,
            grid=grid,
            in_specs=[
                row_tile(x_dim),                    # x tile
                row_tile(add_dim),                  # additional_inputs tile
                full((x_dim, hidden_dim)),          # W1[:x_dim]
                full((add_dim, hidden_dim)),        # W1[x_dim:]
                full((1, hidden_dim)),              # b1
                full((hidden_dim, hidden_dim)),     # W2
                full((1, hidden_dim)),              # b2
                full((hidden_dim, out_dim)),        # W3
                full((1, out_dim)),                 # b3
            ],
            out_specs=pl.BlockSpec((tb_eff, out_dim), lambda i: (i, 0)),
            compiler_params=compiler_params,
        )(x, additional_inputs, w1x, w1a, b1, w2, b2, w3, b3)
    else:
        out = pl.pallas_call(
            _fcnn_kernel_plain,
            out_shape=out_shape,
            grid=grid,
            in_specs=[
                row_tile(x_dim),
                full((x_dim, hidden_dim)),
                full((1, hidden_dim)),
                full((hidden_dim, hidden_dim)),
                full((1, hidden_dim)),
                full((hidden_dim, out_dim)),
                full((1, out_dim)),
            ],
            out_specs=pl.BlockSpec((tb_eff, out_dim), lambda i: (i, 0)),
            compiler_params=compiler_params,
        )(x, w1, b1, w2, b2, w3, b3)

    return out[:B] if pad else out


def init_params(key, in_dim, hidden_dim, out_dim, dtype=jnp.float32):
    """Deterministic init mimicking nn.Linear's U(-1/sqrt(fan_in), 1/sqrt(fan_in))."""
    ks = jax.random.split(key, 6)

    def lin(kw, kb, fan_in, fan_out):
        bound = 1.0 / jnp.sqrt(jnp.asarray(fan_in, dtype))
        w = jax.random.uniform(kw, (fan_in, fan_out), dtype, -bound, bound)
        b = jax.random.uniform(kb, (1, fan_out), dtype, -bound, bound)
        return w, b

    w1, b1 = lin(ks[0], ks[1], in_dim, hidden_dim)
    w2, b2 = lin(ks[2], ks[3], hidden_dim, hidden_dim)
    w3, b3 = lin(ks[4], ks[5], hidden_dim, out_dim)
    return (w1, b1, w2, b2, w3, b3)


def fcnn_reference(x, additional_inputs, params):
    inp = (jnp.concatenate([x, additional_inputs], axis=-1)
           if additional_inputs is not None else x)
    w1, b1, w2, b2, w3, b3 = params
    h = jnp.tanh(inp @ w1 + b1)
    h = jnp.tanh(h @ w2 + b2)
    return h @ w3 + b3


if __name__ == "__main__":
    key = jax.random.PRNGKey(0)
    k_x, k_a, k_p = jax.random.split(key, 3)

    batch = 64          # small example; clamped tile handles it
    x_dim = 4
    add_dim = 4
    in_dim = x_dim + add_dim
    hidden_dim = 32
    out_dim = 4

    x = jax.random.normal(k_x, (batch, x_dim), jnp.float32)
    additional_inputs = jax.random.normal(k_a, (batch, add_dim), jnp.float32)
    params = init_params(k_p, in_dim, hidden_dim, out_dim)

    out = fcnn_forward(x, additional_inputs, params)
    out = jax.block_until_ready(out)

    ref = fcnn_reference(x, additional_inputs, params)
    assert out.shape == (batch, out_dim)
    assert jnp.allclose(out, ref, atol=1e-5, rtol=1e-5)

    # Also exercise the additional_inputs=None path of the module's forward.
    params_nx = init_params(k_p, x_dim, hidden_dim, out_dim)
    out_nx = jax.block_until_ready(fcnn_forward(x, None, params_nx))
    ref_nx = fcnn_reference(x, None, params_nx)
    assert jnp.allclose(out_nx, ref_nx, atol=1e-5, rtol=1e-5)

    print("KERNEL_OK")
</pallas_src>

<mosaic_0001>
module attributes {stable_mosaic.version = 11 : i64} {
  func.func @_fcnn_kernel_split(%arg0: i32, %arg1: memref<64x4xf32, #tpu.memory_space<vmem>>, %arg2: memref<64x4xf32, #tpu.memory_space<vmem>>, %arg3: memref<4x32xf32, #tpu.memory_space<vmem>>, %arg4: memref<4x32xf32, #tpu.memory_space<vmem>>, %arg5: memref<1x32xf32, #tpu.memory_space<vmem>>, %arg6: memref<32x32xf32, #tpu.memory_space<vmem>>, %arg7: memref<1x32xf32, #tpu.memory_space<vmem>>, %arg8: memref<32x4xf32, #tpu.memory_space<vmem>>, %arg9: memref<1x4xf32, #tpu.memory_space<vmem>>, %arg10: memref<64x4xf32, #tpu.memory_space<vmem>>) attributes {dimension_semantics = [#tpu.dimension_semantics<parallel>], iteration_bounds = array<i64: 1>, scalar_prefetch = 0 : i64, scratch_operands = 0 : i64, tpu.core_type = #tpu.core_type<tc>, window_params = [{transform_indices = @transform_0, window_bounds = array<i64: 64, 4>}, {transform_indices = @transform_1, window_bounds = array<i64: 64, 4>}, {pipeline_mode = #tpu.pipeline_mode<synchronous>, transform_indices = @transform_2, window_bounds = array<i64: 4, 32>}, {pipeline_mode = #tpu.pipeline_mode<synchronous>, transform_indices = @transform_3, window_bounds = array<i64: 4, 32>}, {pipeline_mode = #tpu.pipeline_mode<synchronous>, transform_indices = @transform_4, window_bounds = array<i64: 1, 32>}, {pipeline_mode = #tpu.pipeline_mode<synchronous>, transform_indices = @transform_5, window_bounds = array<i64: 32, 32>}, {pipeline_mode = #tpu.pipeline_mode<synchronous>, transform_indices = @transform_6, window_bounds = array<i64: 1, 32>}, {pipeline_mode = #tpu.pipeline_mode<synchronous>, transform_indices = @transform_7, window_bounds = array<i64: 32, 4>}, {pipeline_mode = #tpu.pipeline_mode<synchronous>, transform_indices = @transform_8, window_bounds = array<i64: 1, 4>}, {transform_indices = @transform_9, window_bounds = array<i64: 64, 4>}]} {
    %c0 = arith.constant 0 : index
    %c0_0 = arith.constant 0 : index
    %0 = vector.load %arg1[%c0, %c0_0] : memref<64x4xf32, #tpu.memory_space<vmem>>, vector<64x4xf32>
    %c0_1 = arith.constant 0 : index
    %c0_2 = arith.constant 0 : index
    %1 = vector.load %arg3[%c0_1, %c0_2] : memref<4x32xf32, #tpu.memory_space<vmem>>, vector<4x32xf32>
    %cst = arith.constant dense<0.000000e+00> : vector<64x32xf32>
    %2 = tpu.matmul %0, %1, %cst {dimension_numbers = #tpu.dot_dimension_numbers<[1], [0], [0], [1], [0, 0, 1, 1], [], []>} : vector<64x4xf32>, vector<4x32xf32>, vector<64x32xf32> -> vector<64x32xf32>
    %c0_3 = arith.constant 0 : index
    %c0_4 = arith.constant 0 : index
    %3 = vector.load %arg2[%c0_3, %c0_4] : memref<64x4xf32, #tpu.memory_space<vmem>>, vector<64x4xf32>
    %c0_5 = arith.constant 0 : index
    %c0_6 = arith.constant 0 : index
    %4 = vector.load %arg4[%c0_5, %c0_6] : memref<4x32xf32, #tpu.memory_space<vmem>>, vector<4x32xf32>
    %cst_7 = arith.constant dense<0.000000e+00> : vector<64x32xf32>
    %5 = tpu.matmul %3, %4, %cst_7 {dimension_numbers = #tpu.dot_dimension_numbers<[1], [0], [0], [1], [0, 0, 1, 1], [], []>} : vector<64x4xf32>, vector<4x32xf32>, vector<64x32xf32> -> vector<64x32xf32>
    %6 = arith.addf %2, %5 : vector<64x32xf32>
    %c0_8 = arith.constant 0 : index
    %c0_9 = arith.constant 0 : index
    %7 = vector.load %arg5[%c0_8, %c0_9] : memref<1x32xf32, #tpu.memory_space<vmem>>, vector<1x32xf32>
    %8 = vector.broadcast %7 : vector<1x32xf32> to vector<64x32xf32>
    %9 = arith.addf %6, %8 : vector<64x32xf32>
    %10 = math.tanh %9 : vector<64x32xf32>
    %c0_10 = arith.constant 0 : index
    %c0_11 = arith.constant 0 : index
    %11 = vector.load %arg6[%c0_10, %c0_11] : memref<32x32xf32, #tpu.memory_space<vmem>>, vector<32x32xf32>
    %cst_12 = arith.constant dense<0.000000e+00> : vector<64x32xf32>
    %12 = tpu.matmul %10, %11, %cst_12 {dimension_numbers = #tpu.dot_dimension_numbers<[1], [0], [0], [1], [0, 0, 1, 1], [], []>} : vector<64x32xf32>, vector<32x32xf32>, vector<64x32xf32> -> vector<64x32xf32>
    %c0_13 = arith.constant 0 : index
    %c0_14 = arith.constant 0 : index
    %13 = vector.load %arg7[%c0_13, %c0_14] : memref<1x32xf32, #tpu.memory_space<vmem>>, vector<1x32xf32>
    %14 = vector.broadcast %13 : vector<1x32xf32> to vector<64x32xf32>
    %15 = arith.addf %12, %14 : vector<64x32xf32>
    %16 = math.tanh %15 : vector<64x32xf32>
    %c0_15 = arith.constant 0 : index
    %c0_16 = arith.constant 0 : index
    %17 = vector.load %arg8[%c0_15, %c0_16] : memref<32x4xf32, #tpu.memory_space<vmem>>, vector<32x4xf32>
    %cst_17 = arith.constant dense<0.000000e+00> : vector<64x4xf32>
    %18 = tpu.matmul %16, %17, %cst_17 {dimension_numbers = #tpu.dot_dimension_numbers<[1], [0], [0], [1], [0, 0, 1, 1], [], []>} : vector<64x32xf32>, vector<32x4xf32>, vector<64x4xf32> -> vector<64x4xf32>
    %c0_18 = arith.constant 0 : index
    %c0_19 = arith.constant 0 : index
    %19 = vector.load %arg9[%c0_18, %c0_19] : memref<1x4xf32, #tpu.memory_space<vmem>>, vector<1x4xf32>
    %20 = vector.broadcast %19 : vector<1x4xf32> to vector<64x4xf32>
    %21 = arith.addf %18, %20 : vector<64x4xf32>
    %c0_20 = arith.constant 0 : index
    %c0_21 = arith.constant 0 : index
    %22 = vector.load %arg10[%c0_20, %c0_21] : memref<64x4xf32, #tpu.memory_space<vmem>>, vector<64x4xf32>
    tpu.vector_store %arg10[%c0_20, %c0_21], %21 {strides = array<i32>} : memref<64x4xf32, #tpu.memory_space<vmem>>, vector<64x4xf32>,
    return
  }
  func.func @transform_0(%arg0: i32) -> (i32, i32) {
    %c0_i32 = arith.constant 0 : i32
    %c0_i32_0 = arith.constant 0 : i32
    return %arg0, %c0_i32 : i32, i32
  }
  func.func @transform_1(%arg0: i32) -> (i32, i32) {
    %c0_i32 = arith.constant 0 : i32
    %c0_i32_0 = arith.constant 0 : i32
    return %arg0, %c0_i32 : i32, i32
  }
  func.func @transform_2(%arg0: i32) -> (i32, i32) {
    %c0_i32 = arith.constant 0 : i32
    %c0_i32_0 = arith.constant 0 : i32
    %c0_i32_1 = arith.constant 0 : i32
    return %c0_i32, %c0_i32_0 : i32, i32
  }
  func.func @transform_3(%arg0: i32) -> (i32, i32) {
    %c0_i32 = arith.constant 0 : i32
    %c0_i32_0 = arith.constant 0 : i32
    %c0_i32_1 = arith.constant 0 : i32
    return %c0_i32, %c0_i32_0 : i32, i32
  }
  func.func @transform_4(%arg0: i32) -> (i32, i32) {
    %c0_i32 = arith.constant 0 : i32
    %c0_i32_0 = arith.constant 0 : i32
    %c0_i32_1 = arith.constant 0 : i32
    return %c0_i32, %c0_i32_0 : i32, i32
  }
  func.func @transform_5(%arg0: i32) -> (i32, i32) {
    %c0_i32 = arith.constant 0 : i32
    %c0_i32_0 = arith.constant 0 : i32
    %c0_i32_1 = arith.constant 0 : i32
    return %c0_i32, %c0_i32_0 : i32, i32
  }
  func.func @transform_6(%arg0: i32) -> (i32, i32) {
    %c0_i32 = arith.constant 0 : i32
    %c0_i32_0 = arith.constant 0 : i32
    %c0_i32_1 = arith.constant 0 : i32
    return %c0_i32, %c0_i32_0 : i32, i32
  }
  func.func @transform_7(%arg0: i32) -> (i32, i32) {
    %c0_i32 = arith.constant 0 : i32
    %c0_i32_0 = arith.constant 0 : i32
    %c0_i32_1 = arith.constant 0 : i32
    return %c0_i32, %c0_i32_0 : i32, i32
  }
  func.func @transform_8(%arg0: i32) -> (i32, i32) {
    %c0_i32 = arith.constant 0 : i32
    %c0_i32_0 = arith.constant 0 : i32
    %c0_i32_1 = arith.constant 0 : i32
    return %c0_i32, %c0_i32_0 : i32, i32
  }
  func.func @transform_9(%arg0: i32) -> (i32, i32) {
    %c0_i32 = arith.constant 0 : i32
    %c0_i32_0 = arith.constant 0 : i32
    return %arg0, %c0_i32 : i32, i32
  }
}

</mosaic_0001>

<bundles_post_ra>
// kernel: fcnn_forward.1
= control target key start
LH: loop header
LB: loop body
LE: loop exit
PB: predicated region body
PF: predicated region fallthrough
CT: control target
= control target key end

     0   :  { %vm75_vm0 = vcmask 1043456   ;;  %vm50_vm1 = vcmask 31744   ;;  %vm350_vm2 = vcmask 261120   ;;  %s1044_s3 = inlined_call_operand.vmem [shape: f32[4,32], index: 3, kind: input, shape index: {}]   ;;  %s1045_s1 = inlined_call_operand.vmem [shape: f32[64,4], index: 1, kind: input, shape index: {}]   ;;  %s1046_s2 = inlined_call_operand.vmem [shape: f32[4,32], index: 2, kind: input, shape index: {}]   ;;  %s1047_s0 = inlined_call_operand.vmem [shape: f32[64,4], index: 0, kind: input, shape index: {}]   ;;  %s1048_s5 = inlined_call_operand.vmem [shape: f32[32,32], index: 5, kind: input, shape index: {}]   ;;  %s1049_s4 = inlined_call_operand.vmem [shape: f32[1,32], index: 4, kind: input, shape index: {}]   ;;  %s1050_s7 = inlined_call_operand.vmem [shape: f32[32,4], index: 7, kind: input, shape index: {}]   ;;  %s1051_s6 = inlined_call_operand.vmem [shape: f32[1,32], index: 6, kind: input, shape index: {}]   ;;  %s1052_s8 = inlined_call_operand.vmem [shape: f32[1,4], index: 8, kind: input, shape index: {}]   ;;  %s1053_s9 = inlined_call_operand.vmem [shape: f32[64,4], index: 9, kind: output, shape index: {}]  }
   0x1   :  { %v49_v0 = vld [vmem:[%s1044_s3] sm:$0xf]  ;;  %v42_v2 = vld [vmem:[%s1045_s1 + $0x8] sm:$0xff]  ;;  %v43_v4 = vld [vmem:[%s1045_s1 + $0x10] sm:$0xff] }
   0x2   :  { %v41_v1 = vld [vmem:[%s1045_s1] sm:$0xff]  ;;  %719 = vmatprep.subr.msk.mxu0 %vm75_vm0, %v49_v0  ;;  %v44_v5 = vld [vmem:[%s1045_s1 + $0x18] sm:$0xff]  ;;  %v46_v7 = vld [vmem:[%s1045_s1 + $0x28] sm:$0xff] }
   0x3   :  { %721 = vmatprep.mubr.msk.f32.mxu0 %vm50_vm1, %v41_v1  ;;  %v40_v3 = vld [vmem:[%s1046_s2] sm:$0xf]  ;;  %720 = vmatpush3.msk.msra.mxu0 %vm75_vm0, %v49_v0  ;;  %v47_v8 = vld [vmem:[%s1045_s1 + $0x30] sm:$0xff]  ;;  %v48_v9 = vld [vmem:[%s1045_s1 + $0x38] sm:$0xff] }
   0x4   :  { %722 = vmatmul.mubr.msk.f32.vlgmr.msra.gmra.mrb[0].mxu0 %vm50_vm1, %v42_v2  ;;  %733 = vmatprep.subr.msk.mxu0 %vm75_vm0, %v40_v3  ;;  %v45_v6 = vld [vmem:[%s1045_s1 + $0x20] sm:$0xff]  ;;  %v33_v11 = vld [vmem:[%s1047_s0 + $0x8] sm:$0xff]  ;;  %v34_v12 = vld [vmem:[%s1047_s0 + $0x10] sm:$0xff] }
   0x5   :  { %734 = vmatpush3.msk.msra.mxu0 %vm75_vm0, %v40_v3  ;;  %724 = vmatprep.mubr.msk.f32.mxu0 %vm50_vm1, %v43_v4  ;;  %v32_v10 = vld [vmem:[%s1047_s0] sm:$0xff]  ;;  %v35_v13 = vld [vmem:[%s1047_s0 + $0x18] sm:$0xff]  ;;  %v37_v15 = vld [vmem:[%s1047_s0 + $0x28] sm:$0xff] }
   0x6   :  { %v36_v14 = vld [vmem:[%s1047_s0 + $0x20] sm:$0xff]  ;;  %v38_v16 = vld [vmem:[%s1047_s0 + $0x30] sm:$0xff]  ;;  %v39_v17 = vld [vmem:[%s1047_s0 + $0x38] sm:$0xff] }
   0x7   :  { %v339_v18 = vld [vmem:[%s1048_s5] sm:$0xff]  ;;  %v340_v19 = vld [vmem:[%s1048_s5 + $0x8] sm:$0xff]  ;;  %v341_v21 = vld [vmem:[%s1048_s5 + $0x10] sm:$0xff] }
   0x8   :  { %725 = vmatmul.mubr.msk.f32.gmra.mrb[2].mxu0 %vm50_vm1, %v44_v5  ;;  %v787_v20 = vpack.c.bf16 %v340_v19, %v339_v18  ;;  %v342_v22 = vld [vmem:[%s1048_s5 + $0x18] sm:$0xff]  ;;  %v658_v24 = vld [vmem:[%s1049_s4] ss:$0 sm:$0xff]  ;;  %v489_v50 = vld [vmem:[%s1050_s7 + $0x8] sm:$0xff] }
   0x9   :  { %727 = vmatprep.mubr.msk.f32.mxu0 %vm50_vm1, %v45_v6  ;;  %v791_v23 = vpack.c.bf16 %v342_v22, %v341_v21  ;;  %v488_v49 = vld [vmem:[%s1050_s7] sm:$0xff]  ;;  %v490_v52 = vld [vmem:[%s1050_s7 + $0x10] sm:$0xff]  ;;  %v491_v53 = vld [vmem:[%s1050_s7 + $0x18] sm:$0xff] }
   0xa   :  { %788 = vmatprep.subr.bf16.mxu1 %v787_v20  ;;  %v795_v51 = vpack.c.bf16 %v489_v50, %v488_v49  ;;  %v799_v54 = vpack.c.bf16 %v491_v53, %v490_v52  ;;  %v659_v55 = vld [vmem:[%s1051_s6] ss:$0 sm:$0xff] }
   0xb   :  { %790 = vmatpush3.bf16.msra.mxu1 %v787_v20 }
   0xc   :  { %728 = vmatmul.mubr.msk.f32.gmra.mrb[4].mxu0 %vm50_vm1, %v46_v7  ;;  %792 = vmatprep.subr.bf16.mxu1 %v791_v23 }
   0xd   :  { %730 = vmatprep.mubr.msk.f32.mxu0 %vm50_vm1, %v47_v8 }
   0xf   :  { %794 = vmatpush3.bf16.msra.mxu1 %v791_v23 }
  0x10   :  { %731 = vmatmul.mubr.msk.f32.gmra.mrb[6].mxu0 %vm50_vm1, %v48_v9  ;;  %796 = vmatprep.subr.bf16.mxu1 %v795_v51 }
  0x11   :  { %735 = vmatprep.mubr.msk.f32.mxu0 %vm50_vm1, %v32_v10 }
  0x14   :  { %736 = vmatmul.mubr.msk.f32.vlgmr.msra.gmra.mrb[0].mxu0 %vm50_vm1, %v33_v11 }
  0x15   :  { %738 = vmatprep.mubr.msk.f32.mxu0 %vm50_vm1, %v34_v12 }
  0x18   :  { %739 = vmatmul.mubr.msk.f32.gmra.mrb[2].mxu0 %vm50_vm1, %v35_v13 }
  0x19   :  { %741 = vmatprep.mubr.msk.f32.mxu0 %vm50_vm1, %v36_v14 }
  0x1c   :  { %742 = vmatmul.mubr.msk.f32.gmra.mrb[4].mxu0 %vm50_vm1, %v37_v15 }
  0x1d   :  { %744 = vmatprep.mubr.msk.f32.mxu0 %vm50_vm1, %v38_v16  ;;  %v668_v16 = vld [vmem:[%s1052_s8] ss:$0 sm:$0xff] }
  0x20   :  { %745 = vmatmul.mubr.msk.f32.gmra.mrb[6].mxu0 %vm50_vm1, %v39_v17 }
  0xe7   :  { %v737_v25 = vpop.f32.mrb[0].mxu0 }
  0xe8   :  { %v324_v26 = vadd.f32 %v737_v25, %v658_v24  ;;  %v277_v27 = vpop.f32.mrb[1].mxu0 }
  0xe9   :  { %v323_v28 = vadd.f32 %v658_v24, %v277_v27 }
  0xeb   :  { %811 = vtanh.f32 %v323_v28  ;;  %v740_v29 = vpop.f32.mrb[2].mxu0 }
  0xec   :  { %813 = vtanh.f32 %v324_v26  ;;  %v326_v30 = vadd.f32 %v740_v29, %v658_v24  ;;  %v287_v31 = vpop.f32.mrb[3].mxu0 }
  0xed   :  { %v325_v32 = vadd.f32 %v658_v24, %v287_v31 }
  0xef   :  { %815 = vtanh.f32 %v325_v32  ;;  %v743_v33 = vpop.f32.mrb[4].mxu0 }
  0xf0   :  { %817 = vtanh.f32 %v326_v30  ;;  %v328_v34 = vadd.f32 %v743_v33, %v658_v24  ;;  %v297_v35 = vpop.f32.mrb[5].mxu0 }
  0xf1   :  { %v327_v36 = vadd.f32 %v658_v24, %v297_v35 }
  0xf3   :  { %819 = vtanh.f32 %v327_v36  ;;  %v746_v37 = vpop.f32.mrb[6].mxu0 }
  0xf4   :  { %821 = vtanh.f32 %v328_v34  ;;  %v330_v38 = vadd.f32 %v746_v37, %v658_v24  ;;  %v307_v39 = vpop.f32.mrb[7].mxu0 }
  0xf5   :  { %v812_v40 = vpop.eup %811  ;;  %v329_v41 = vadd.f32 %v658_v24, %v307_v39 }
  0xf6   :  { %v814_v42 = vpop.eup %813  ;;  %755 = vmatprep.mubr.msk.f32.mxu1 %vm350_vm2, %v812_v40 }
  0xf7   :  { %823 = vtanh.f32 %v329_v41  ;;  %756 = vmatmul.mubr.msk.f32.vlgmr.msra.gmra.mrb[0].mxu1 %vm350_vm2, %v814_v42 }
  0xf8   :  { %825 = vtanh.f32 %v330_v38  ;;  %798 = vmatpush3.bf16.msra.mxu1 %v795_v51 }
  0xf9   :  { %v816_v43 = vpop.eup %815  ;;  %800 = vmatprep.subr.bf16.mxu1 %v799_v54 }
  0xfa   :  { %v818_v44 = vpop.eup %817  ;;  %758 = vmatprep.mubr.msk.f32.mxu1 %vm350_vm2, %v816_v43 }
  0xfb   :  { %759 = vmatmul.mubr.msk.f32.gmra.mrb[2].mxu1 %vm350_vm2, %v818_v44 }
  0xfc   :  { %802 = vmatpush3.bf16.msra.mxu1 %v799_v54 }
  0xfd   :  { %v820_v45 = vpop.eup %819 }
  0xfe   :  { %v822_v46 = vpop.eup %821  ;;  %761 = vmatprep.mubr.msk.f32.mxu1 %vm350_vm2, %v820_v45 }
  0xff   :  { %762 = vmatmul.mubr.msk.f32.gmra.mrb[4].mxu1 %vm350_vm2, %v822_v46 }
 0x101   :  { %v824_v47 = vpop.eup %823 }
 0x102   :  { %v826_v48 = vpop.eup %825  ;;  %764 = vmatprep.mubr.msk.f32.mxu1 %vm350_vm2, %v824_v47 }
 0x103   :  { %765 = vmatmul.mubr.msk.f32.gmra.mrb[6].mxu1 %vm350_vm2, %v826_v48 }
 0x1ca   :  { %v757_v56 = vpop.f32.mrb[0].mxu1 }
 0x1cb   :  { %v447_v57 = vadd.f32 %v757_v56, %v659_v55  ;;  %v441_v58 = vpop.f32.mrb[1].mxu1 }
 0x1cc   :  { %v442_v59 = vadd.f32 %v659_v55, %v441_v58 }
 0x1ce   :  { %827 = vtanh.f32 %v442_v59  ;;  %v760_v60 = vpop.f32.mrb[2].mxu1 }
 0x1cf   :  { %829 = vtanh.f32 %v447_v57  ;;  %v457_v61 = vadd.f32 %v760_v60, %v659_v55  ;;  %v451_v62 = vpop.f32.mrb[3].mxu1 }
 0x1d0   :  { %v452_v63 = vadd.f32 %v659_v55, %v451_v62 }
 0x1d2   :  { %831 = vtanh.f32 %v452_v63  ;;  %v763_v0 = vpop.f32.mrb[4].mxu1 }
 0x1d3   :  { %833 = vtanh.f32 %v457_v61  ;;  %v467_v1 = vadd.f32 %v763_v0, %v659_v55  ;;  %v461_v2 = vpop.f32.mrb[5].mxu1 }
 0x1d4   :  { %v462_v3 = vadd.f32 %v659_v55, %v461_v2 }
 0x1d6   :  { %835 = vtanh.f32 %v462_v3  ;;  %v766_v4 = vpop.f32.mrb[6].mxu1 }
 0x1d7   :  { %837 = vtanh.f32 %v467_v1  ;;  %v477_v5 = vadd.f32 %v766_v4, %v659_v55  ;;  %v471_v6 = vpop.f32.mrb[7].mxu1 }
 0x1d8   :  { %v828_v7 = vpop.eup %827  ;;  %v472_v8 = vadd.f32 %v659_v55, %v471_v6 }
 0x1d9   :  { %v830_v9 = vpop.eup %829  ;;  %775 = vmatprep.mubr.msk.f32.mxu1 %vm350_vm2, %v828_v7 }
 0x1da   :  { %839 = vtanh.f32 %v472_v8  ;;  %776 = vmatmul.mubr.msk.f32.vlgmr.msra.gmra.mrb[8].mxu1 %vm350_vm2, %v830_v9 }
 0x1db   :  { %841 = vtanh.f32 %v477_v5 }
 0x1dc   :  { %v832_v10 = vpop.eup %831 }
 0x1dd   :  { %v834_v11 = vpop.eup %833  ;;  %778 = vmatprep.mubr.msk.f32.mxu1 %vm350_vm2, %v832_v10 }
 0x1de   :  { %779 = vmatmul.mubr.msk.f32.gmra.mrb[10].mxu1 %vm350_vm2, %v834_v11 }
 0x1e0   :  { %v836_v12 = vpop.eup %835 }
 0x1e1   :  { %v838_v13 = vpop.eup %837  ;;  %781 = vmatprep.mubr.msk.f32.mxu1 %vm350_vm2, %v836_v12 }
 0x1e2   :  { %782 = vmatmul.mubr.msk.f32.gmra.mrb[12].mxu1 %vm350_vm2, %v838_v13 }
 0x1e4   :  { %v840_v14 = vpop.eup %839 }
 0x1e5   :  { %v842_v15 = vpop.eup %841  ;;  %784 = vmatprep.mubr.msk.f32.mxu1 %vm350_vm2, %v840_v14 }
 0x1e6   :  { %785 = vmatmul.mubr.msk.f32.gmra.mrb[14].mxu1 %vm350_vm2, %v842_v15 }
 0x2ad   :  { %v777_v17 = vpop.f32.mrb[8].mxu1 }
 0x2ae   :  { %v595_v18 = vadd.f32 %v777_v17, %v668_v16  ;;  %v589_v19 = vpop.f32.mrb[9].mxu1 }
 0x2af   :  { %v590_v20 = vadd.f32 %v668_v16, %v589_v19 }
 0x2b0   :  { %629 = vst.msk [vmem:[%s1053_s9 + $0x8] sm:$0xff] %vm50_vm1, %v595_v18 }
 0x2b1   :  { %628 = vst.msk [vmem:[%s1053_s9] sm:$0xff] %vm50_vm1, %v590_v20  ;;  %v780_v21 = vpop.f32.mrb[10].mxu1 }
 0x2b2   :  { %v605_v22 = vadd.f32 %v780_v21, %v668_v16  ;;  %v599_v23 = vpop.f32.mrb[11].mxu1 }
 0x2b3   :  { %v600_v24 = vadd.f32 %v668_v16, %v599_v23 }
 0x2b4   :  { %631 = vst.msk [vmem:[%s1053_s9 + $0x18] sm:$0xff] %vm50_vm1, %v605_v22 }
 0x2b5   :  { %630 = vst.msk [vmem:[%s1053_s9 + $0x10] sm:$0xff] %vm50_vm1, %v600_v24  ;;  %v783_v25 = vpop.f32.mrb[12].mxu1 }
 0x2b6   :  { %v615_v26 = vadd.f32 %v783_v25, %v668_v16  ;;  %v609_v27 = vpop.f32.mrb[13].mxu1 }
 0x2b7   :  { %v610_v28 = vadd.f32 %v668_v16, %v609_v27 }
 0x2b8   :  { %633 = vst.msk [vmem:[%s1053_s9 + $0x28] sm:$0xff] %vm50_vm1, %v615_v26 }
 0x2b9   :  { %632 = vst.msk [vmem:[%s1053_s9 + $0x20] sm:$0xff] %vm50_vm1, %v610_v28  ;;  %v786_v29 = vpop.f32.mrb[14].mxu1 }
 0x2ba   :  { %v625_v30 = vadd.f32 %v786_v29, %v668_v16  ;;  %v619_v31 = vpop.f32.mrb[15].mxu1 }
 0x2bb   :  { %v620_v32 = vadd.f32 %v668_v16, %v619_v31 }
 0x2bc   :  { %635 = vst.msk [vmem:[%s1053_s9 + $0x38] sm:$0xff] %vm50_vm1, %v625_v30 }
 0x2bd   :  { %634 = vst.msk [vmem:[%s1053_s9 + $0x30] sm:$0xff] %vm50_vm1, %v620_v32 }

</bundles_post_ra>
